<compile_context>
chip_gen: v5e
topology: v5e:2x2
jax: 0.10.0
libtpu: 0.0.40
codegen_flags: <defaults>
</compile_context>

<pallas_src>
import math

import jax
import jax.numpy as jnp
from jax.experimental import pallas as pl
from jax.experimental.pallas import tpu as pltpu


_LANE = 128
_SUBLANE = 8
_TILE_BUDGET_BYTES = 8 << 20     # per output buffer (double-buffered by the pipeline)
_FAST_PATH_BYTES = 1 << 20       # below this, plain XLA broadcast wins


def _broadcast_kernel(const_ref, out_ref):
    # const_ref: (1, TF) lane block of the constant pattern (same block for
    #            every row-step -> DMA'd once per lane block).
    # out_ref:   (TR, TF) output block; every row equals the constant row.
    out_ref[...] = jnp.broadcast_to(const_ref[...], out_ref.shape)


def _round_up(n, m):
    return -(-n // m) * m


def _pick_lane_tile(lanes, itemsize, budget):
    """Lane-axis block: full `lanes`, else the largest multiple-of-128 divisor
    whose (8, tf) slab fits the budget (bounds VMEM for huge constants)."""
    if lanes % _LANE != 0:
        return lanes                         # fallback layout: tiny feat, keep whole
    max_tf = max(_LANE, (budget // (_SUBLANE * itemsize)) // _LANE * _LANE)
    if lanes <= max_tf:
        return lanes
    best = _LANE
    tf = _LANE
    while tf <= max_tf:                      # trace-time Python; cheap
        if lanes % tf == 0:
            best = tf
        tf += _LANE
    return best


def _pick_row_tile(rows, tf, itemsize, budget):
    """Row-axis block: as many rows as fit the budget (sublane-aligned), but
    never fewer than 2 row-steps once rows >= 16 (v7x dual-TC writeback);
    prefer 4 steps when each step still writes >= 2 MiB."""
    max_tr = max(_SUBLANE, (budget // (tf * itemsize)) // _SUBLANE * _SUBLANE)
    if rows <= max_tr and rows < 2 * _SUBLANE:
        return rows                          # tiny: one step, block == full dim
    half = _round_up(_round_up(rows, 2) // 2, _SUBLANE)
    quarter = _round_up(_round_up(rows, 4) // 4, _SUBLANE)
    tr = quarter if quarter * tf * itemsize >= (2 << 20) else half
    return max(_SUBLANE, min(max_tr, tr))


def constant_input_forward(x, const_param, *, min_kernel_bytes=_FAST_PATH_BYTES):
    """Replicates ConstantInput.forward.

    x:           any array; only x.shape[0] (static batch) is used.
    const_param: (1, C, H, W) learned constant.
    returns:     (B, C, H, W) array, const_param repeated along batch.
    """
    batch = x.shape[0]
    _, c, h, w = const_param.shape
    feat = c * h * w
    itemsize = const_param.dtype.itemsize
    total_bytes = batch * feat * itemsize

    # Tiny-output fast path: custom-call launch overhead dwarfs the copy and
    # a plain broadcast fuses into whatever consumes it.
    if total_bytes < min_kernel_bytes:
        return jnp.broadcast_to(const_param, (batch, c, h, w))

    const_flat = const_param.reshape(1, feat)

    # ---- Choose a lane-dense 2-D view (rows x lanes) of the output. -------
    # Row-major bytes of (batch, feat) and (batch*feat // lanes, lanes) are
    # identical whenever lanes is a multiple of feat, so we can fold whole
    # batch rows into the lane dimension when feat itself is not lane-dense.
    if feat % _LANE == 0:
        rows, lanes = batch, feat
        pattern = const_flat                           # (1, lanes)
    else:
        period = _LANE // math.gcd(feat, _LANE)        # batch rows per output row
        if batch % period == 0:
            rows, lanes = batch // period, feat * period
            pattern = jnp.tile(const_flat, (1, period))  # (1, lanes), lane-dense
        else:
            # Cannot fold exactly; fall back to (batch, feat).  Correct, but a
            # trailing dim < 128 lowers to masked stores (edge case only).
            rows, lanes = batch, feat
            pattern = const_flat

    # ---- Tile sizes + explicit VMEM contract. ------------------------------
    tf = _pick_lane_tile(lanes, itemsize, _TILE_BUDGET_BYTES)
    tr = _pick_row_tile(rows, tf, itemsize, _TILE_BUDGET_BYTES)

    out_tile_bytes = tr * tf * itemsize
    const_tile_bytes = _SUBLANE * tf * itemsize        # (1, tf) pads to 8 sublanes
    vmem_bytes = 2 * out_tile_bytes + 2 * const_tile_bytes + (2 << 20)

    # Lane blocks outermost so the constant block index is unchanged across
    # the inner row loop (fetched once per lane block).
    grid = (pl.cdiv(lanes, tf), pl.cdiv(rows, tr))

    out_flat = pl.pallas_call(
        _broadcast_kernel,
        out_shape=jax.ShapeDtypeStruct((rows, lanes), const_param.dtype),
        grid_spec=pltpu.PrefetchScalarGridSpec(
            num_scalar_prefetch=0,
            grid=grid,
            in_specs=[pl.BlockSpec((1, tf), lambda l, r: (0, l))],
            out_specs=pl.BlockSpec((tr, tf), lambda l, r: (r, l)),
        ),
        compiler_params=pltpu.CompilerParams(
            dimension_semantics=("parallel", "parallel"),
            vmem_limit_bytes=int(vmem_bytes),
        ),
        cost_estimate=pl.CostEstimate(
            flops=0,
            transcendentals=0,
            bytes_accessed=int((batch * feat + feat) * itemsize),
        ),
    )(pattern)

    return out_flat.reshape(batch, c, h, w)


if __name__ == "__main__":
    key = jax.random.PRNGKey(0)
    k_param, k_x = jax.random.split(key)

    channel, size = 4, 4
    batch = 2

    # Deterministic "randn" parameter (nn.Parameter(torch.randn(1, C, S, S))).
    const_param = jax.random.normal(
        k_param, (1, channel, size, size), dtype=jnp.float32
    )
    # Forward input: only its batch dim matters (content ignored, like PyTorch).
    x = jax.random.normal(k_x, (batch, 4, 16, 16), dtype=jnp.float32)

    # 1) Module-sized example, forced through the Pallas kernel
    #    (feat=64 < 128, batch even -> lane-folded to a (1, 128) slab).
    out = jax.block_until_ready(
        constant_input_forward(x, const_param, min_kernel_bytes=0)
    )
    ref = jnp.broadcast_to(const_param, (batch, channel, size, size))
    assert out.shape == ref.shape
    assert bool(jnp.allclose(out, ref))

    # 2) Non-foldable, non-divisible batch (fallback layout + ragged row block).
    x19 = jnp.zeros((19, 1, 1, 1), dtype=jnp.float32)
    out19 = jax.block_until_ready(
        constant_input_forward(x19, const_param, min_kernel_bytes=0)
    )
    ref19 = jnp.broadcast_to(const_param, (19, channel, size, size))
    assert out19.shape == ref19.shape
    assert bool(jnp.allclose(out19, ref19))

    # 3) Above the fast-path threshold -> natural kernel path, lane-dense
    #    feat=1024 and >= 2 parallel row-steps (512 rows -> 2 steps of 256).
    cp_big = jax.random.normal(k_param, (1, 64, size, size), dtype=jnp.float32)
    x_big = jnp.zeros((512, 1, 1, 1), dtype=jnp.float32)
    out_big = jax.block_until_ready(constant_input_forward(x_big, cp_big))
    ref_big = jnp.broadcast_to(cp_big, (512, 64, size, size))
    assert out_big.shape == ref_big.shape
    assert bool(jnp.allclose(out_big, ref_big))

    # 4) Tiny-output fast path (default threshold): plain XLA broadcast.
    out_fp = jax.block_until_ready(constant_input_forward(x, const_param))
    assert bool(jnp.allclose(out_fp, ref))

    print("KERNEL_OK")
</pallas_src>

<mosaic_0001>
module attributes {stable_mosaic.version = 11 : i64} {
  func.func @_broadcast_kernel(%arg0: i32, %arg1: i32, %arg2: memref<1x128xf32, #tpu.memory_space<vmem>>, %arg3: memref<1x128xf32, #tpu.memory_space<vmem>>) attributes {dimension_semantics = [#tpu.dimension_semantics<parallel>, #tpu.dimension_semantics<parallel>], iteration_bounds = array<i64: 1, 1>, scalar_prefetch = 0 : i64, scratch_operands = 0 : i64, tpu.core_type = #tpu.core_type<tc>, window_params = [{transform_indices = @transform_0, window_bounds = array<i64: 1, 128>}, {transform_indices = @transform_1, window_bounds = array<i64: 1, 128>}]} {
    %c0 = arith.constant 0 : index
    %c0_0 = arith.constant 0 : index
    %0 = vector.load %arg2[%c0, %c0_0] : memref<1x128xf32, #tpu.memory_space<vmem>>, vector<1x128xf32>
    %c0_1 = arith.constant 0 : index
    %c0_2 = arith.constant 0 : index
    %1 = vector.load %arg3[%c0_1, %c0_2] : memref<1x128xf32, #tpu.memory_space<vmem>>, vector<1x128xf32>
    tpu.vector_store %arg3[%c0_1, %c0_2], %0 {strides = array<i32>} : memref<1x128xf32, #tpu.memory_space<vmem>>, vector<1x128xf32>,
    return
  }
  func.func @transform_0(%arg0: i32, %arg1: i32) -> (i32, i32) {
    %c0_i32 = arith.constant 0 : i32
    %c0_i32_0 = arith.constant 0 : i32
    return %c0_i32, %arg0 : i32, i32
  }
  func.func @transform_1(%arg0: i32, %arg1: i32) -> (i32, i32) {
    %c0_i32 = arith.constant 0 : i32
    return %arg1, %arg0 : i32, i32
  }
}

</mosaic_0001>

<bundles_post_ra>
// kernel: tpu_custom_call.1
= control target key start
LH: loop header
LB: loop body
LE: loop exit
PB: predicated region body
PF: predicated region fallthrough
CT: control target
= control target key end

     0   :  { %6 = vsyncpa [#allocation3], 0  ;;  %s114_s0 = inlined_call_operand.hbm [shape: f32[1,128], index: 0, kind: input, shape index: {}]   ;;  %s115_s1 = inlined_call_operand.hbm [shape: f32[1,128], index: 1, kind: output, shape index: {}]  }
   0x1   :  { %7 = vsyncpa [#allocation4], 0  ;;  %s13_s8 = sshll.u32 %s114_s0, 4  ;;  %s96_s9 = smov [#allocation2]   ;;  %s14_s8 = int_to_ptr.hbm [resolvable:$true] %s13_s8 }
   0x2   :  { %s15_s10 = sshll.u32 %s96_s9, 4  ;;  %s16_s10 = int_to_ptr.vmem [resolvable:$true] %s15_s10 }
   0x3   :  { %18 = dma.hbm_to_vmem [thread:$0]  %s14_s8, 16, %s16_s10, [#allocation3]  }
   0x4   :  { %92 = dma.done.wait [#allocation3], 16  }
   0x5   :  { %93 = vsyncadd [#allocation3], 4294967280  ;;  %s97_s11 = smov [#allocation5]   ;;  %s32_s15 = sshll.u32 %s115_s1, 4  ;;  %v23_v0 = vld [vmem:[#allocation2] sm:$0x1]  ;;  %s33_s15 = int_to_ptr.hbm [resolvable:$true] %s32_s15 }
   0x6   :  { %s30_s12 = sshll.u32 %s97_s11, 4  ;;  %24 = vst [vmem:[#allocation5] sm:$0x1] %v23_v0  ;;  %s31_s12 = int_to_ptr.vmem [resolvable:$true] %s30_s12 }
   0x7   :  { %35 = dma.vmem_to_hbm [thread:$0]  %s31_s12, 16, %s33_s15, [#allocation4]  }
   0x8   :  { %94 = dma.done.wait [#allocation4], 16  }
   0x9   :  { %95 = vsyncadd [#allocation4], 4294967280 }
   0xa   :  { %40 = vsyncpa [#allocation3], 1 }
   0xb   :  { %41 = vsyncpa [#allocation4], 1 }

</bundles_post_ra>
